<compile_context>
chip_gen: v7x
topology: tpu7x:2x2x1
jax: 0.10.0
libtpu: 0.0.40
codegen_flags: <defaults>
</compile_context>

<pallas_src>
import functools
from typing import NamedTuple

import numpy as np
import jax
import jax.numpy as jnp
from jax import lax
from jax.experimental import pallas as pl
from jax.experimental.pallas import tpu as pltpu

_LANES = 128
_SUBLANES = 8


def _round_up(x, m):
    return ((x + m - 1) // m) * m


def _pick_tk(f_dim, d_pad):
    """K-tile size: ~4 MiB of bf16 weight per grid step (multiple of 128)."""
    target_w_bytes = 4 << 20
    tk = max(_LANES, (target_w_bytes // (d_pad * 2)) // _LANES * _LANES)
    return int(min(tk, _round_up(f_dim, _LANES)))


class PreparedBackbone(NamedTuple):
    """Flatten+Linear backbone weight, padded & cast once (hoisted per review)."""
    w_bf: jax.Array          # (f_pad, d_pad) bf16
    f_dim: int
    d_dim: int
    d_pad: int
    tk: int


def prepare_backbone(w, b=None):
    """Pad & cast the Linear(F, D) weight to kernel layout ONCE per param set.

    `b` is accepted for interface parity but never used: the bias cancels
    exactly in the euclidean distance (prototypes are means of embeddings).
    """
    del b
    f_dim, d_dim = w.shape
    d_pad = _round_up(d_dim, _LANES)
    tk = _pick_tk(f_dim, d_pad)
    f_pad = _round_up(f_dim, tk)
    w_bf = jnp.pad(jnp.asarray(w, jnp.bfloat16),
                   ((0, f_pad - f_dim), (0, d_pad - d_dim)))
    return PreparedBackbone(w_bf=w_bf, f_dim=f_dim, d_dim=d_dim,
                            d_pad=d_pad, tk=tk)


def _proto_kernel(x_ref, w_ref, scores_ref, acc_ref, *, pp_rows):
    """One K-tile step: accumulate [Xp ; Xq] @ W, finalize -cdist on last step.

    x_ref:      (pp_rows + qp_rows, TK) bf16  -- stacked [prototype ; query] inputs
    w_ref:      (TK, Dpad)              bf16  -- embedding weight tile
    scores_ref: (qp_rows, pp_rows)      f32   -- lane-dense scores (-dists)
    acc_ref:    (pp_rows + qp_rows, Dpad) f32 -- embedding accumulator (scratch)
    """
    k = pl.program_id(0)
    prod = jnp.dot(x_ref[...], w_ref[...], preferred_element_type=jnp.float32)

    @pl.when(k == 0)
    def _first():
        acc_ref[...] = prod            # direct write: no zero-init pass

    @pl.when(k > 0)
    def _accum():
        acc_ref[...] += prod

    @pl.when(k == pl.num_programs(0) - 1)
    def _finalize():
        z = acc_ref[...]                    # f32 embeddings
        zp = z[:pp_rows, :]                 # (128-lane-aligned) prototype block
        zq = z[pp_rows:, :]                 # query block

        # Euclidean cdist in f32: ||q||^2 + ||p||^2 - 2 q.p  (cross on MXU,
        # contracting last dims — no materialized transpose of zp).
        qq = jnp.sum(zq * zq, axis=-1, keepdims=True)       # (qp_rows, 1)
        pp = jnp.sum(zp * zp, axis=-1, keepdims=True)       # (pp_rows, 1)
        cross = lax.dot_general(zq, zp, (((1,), (1,)), ((), ())),
                                preferred_element_type=jnp.float32)
        d2 = jnp.maximum(qq + pp.T - 2.0 * cross, 0.0)
        scores_ref[...] = -jnp.sqrt(d2)     # scores = -dists


@functools.partial(jax.jit, static_argnames=("n_way", "tk", "pp_rows", "qp_rows"))
def _episode_forward(support_images, query_images, proto_mat, w_bf, *,
                     n_way, tk, pp_rows, qp_rows):
    ns = support_images.shape[0]
    nq = query_images.shape[0]
    f_dim = int(np.prod(support_images.shape[1:]))
    f_pad, d_pad = w_bf.shape
    rows = pp_rows + qp_rows

    xs = support_images.reshape(ns, f_dim)
    xq = query_images.reshape(nq, f_dim)

    # Pre-reduce support rows in input space (exact f32 mean), then cast once:
    # (proto_mat @ xs) @ W == proto_mat @ (xs @ W).
    xp_bf = jnp.dot(proto_mat, xs.astype(jnp.float32)).astype(jnp.bfloat16)
    xq_bf = xq.astype(jnp.bfloat16)

    # Single bf16 pad + concat (no padded f32 temporaries). Prototype rows are
    # padded to a full 128-lane block so the kernel epilogue needs no concat;
    # the extra zero LHS rows in the K loop hide under the W DMA.
    xp_pad = jnp.pad(xp_bf, ((0, pp_rows - n_way), (0, f_pad - f_dim)))
    xq_pad = jnp.pad(xq_bf, ((0, qp_rows - nq), (0, f_pad - f_dim)))
    x_all = jnp.concatenate([xp_pad, xq_pad], axis=0)

    n_k = f_pad // tk

    # Explicit VMEM budget (double-buffered bf16 W + X, f32 accumulator,
    # score block), with headroom, capped below v7x's 64 MiB physical VMEM.
    vmem_need = (2 * tk * d_pad * 2
                 + 2 * rows * tk * 2
                 + rows * d_pad * 4
                 + 2 * qp_rows * pp_rows * 4)
    vmem_limit = int(min(vmem_need + (8 << 20), 48 << 20))

    kernel = functools.partial(_proto_kernel, pp_rows=pp_rows)

    return pl.pallas_call(
        kernel,
        out_shape=jax.ShapeDtypeStruct((qp_rows, pp_rows), jnp.float32),
        grid_spec=pltpu.PrefetchScalarGridSpec(
            num_scalar_prefetch=0,
            grid=(n_k,),                                    # K (reduction) axis
            in_specs=[
                pl.BlockSpec((rows, tk), lambda k: (0, k)),
                pl.BlockSpec((tk, d_pad), lambda k: (k, 0)),
            ],
            out_specs=pl.BlockSpec((qp_rows, pp_rows), lambda k: (0, 0)),
            scratch_shapes=[pltpu.VMEM((rows, d_pad), jnp.float32)],
        ),
        compiler_params=pltpu.CompilerParams(
            dimension_semantics=("arbitrary",),
            vmem_limit_bytes=vmem_limit),
    )(x_all, w_bf)


def prototypical_scores(support_images, support_labels, query_images, backbone):
    """JAX wrapper mirroring PrototypicalNetworks.forward (backbone = flatten+linear)."""
    # torch.unique / torch.nonzero label bookkeeping is data-dependent glue:
    # computed host-side from concrete labels (remapped so non-contiguous
    # label values cannot produce empty / NaN prototype rows).
    labels = np.asarray(support_labels)
    classes = np.unique(labels)
    n_way = int(len(classes))
    onehot = (labels[None, :] == classes[:, None]).astype(np.float32)
    proto_mat = jnp.asarray(onehot / onehot.sum(axis=1, keepdims=True))  # (n_way, Ns)

    nq = int(query_images.shape[0])
    pp_rows = _round_up(max(n_way, 1), _LANES)   # full 128-lane prototype block
    qp_rows = _round_up(max(nq, 1), _SUBLANES)

    scores_pad = _episode_forward(
        support_images, query_images, proto_mat, backbone.w_bf,
        n_way=n_way, tk=backbone.tk, pp_rows=pp_rows, qp_rows=qp_rows)
    return scores_pad[:nq, :n_way]


def _reference_scores(support_images, support_labels, query_images, w, b):
    """Pure-JAX f32 reference replicating the PyTorch forward (with bias)."""
    ns = support_images.shape[0]
    nq = query_images.shape[0]
    f_dim = int(np.prod(support_images.shape[1:]))
    zs = support_images.reshape(ns, f_dim).astype(jnp.float32) @ w + b
    zq = query_images.reshape(nq, f_dim).astype(jnp.float32) @ w + b
    labels = np.asarray(support_labels)
    classes = np.unique(labels)
    zp = jnp.stack([zs[labels == c].mean(0) for c in classes])
    d = jnp.sqrt(jnp.maximum(
        jnp.sum((zq[:, None, :] - zp[None, :, :]) ** 2, axis=-1), 0.0))
    return -d


if __name__ == "__main__":
    # Small deterministic episode: n_way=3, 2 shots, 5 queries, images 4x16x16.
    C, H, W = 4, 16, 16
    n_way, n_shot, n_query = 3, 2, 5
    Ns = n_way * n_shot
    F = C * H * W
    D = 32

    key = jax.random.PRNGKey(0)
    k_sup, k_qry, k_w, k_b = jax.random.split(key, 4)

    support_images = jax.random.normal(k_sup, (Ns, C, H, W), dtype=jnp.float32)
    query_images = jax.random.normal(k_qry, (n_query, C, H, W), dtype=jnp.float32)
    support_labels = np.repeat(np.arange(n_way), n_shot).astype(np.int32)  # [0,0,1,1,2,2]

    # Deterministic Linear(F, D) params (PyTorch-style uniform init scale).
    lim = 1.0 / np.sqrt(F)
    w = jax.random.uniform(k_w, (F, D), minval=-lim, maxval=lim, dtype=jnp.float32)
    b = jax.random.uniform(k_b, (D,), minval=-lim, maxval=lim, dtype=jnp.float32)

    # Weight pad/cast hoisted: done once per parameter set, not per call.
    backbone = prepare_backbone(w, b)

    scores = prototypical_scores(support_images, support_labels, query_images, backbone)
    scores = jax.block_until_ready(scores)

    ref = _reference_scores(support_images, support_labels, query_images, w, b)
    # bf16 MXU operands vs f32 reference -> loosened (but still tight) tolerance.
    np.testing.assert_allclose(np.asarray(scores), np.asarray(ref),
                               rtol=2e-2, atol=2e-2)

    print("KERNEL_OK")
</pallas_src>

<mosaic_0001>
module attributes {stable_mosaic.version = 11 : i64} {
  func.func @_proto_kernel(%arg0: i32, %arg1: memref<136x1024xbf16, #tpu.memory_space<vmem>>, %arg2: memref<1024x128xbf16, #tpu.memory_space<vmem>>, %arg3: memref<8x128xf32, #tpu.memory_space<vmem>>, %arg4: memref<136x128xf32, #tpu.memory_space<vmem>>) attributes {dimension_semantics = [#tpu.dimension_semantics<arbitrary>], iteration_bounds = array<i64: 1>, scalar_prefetch = 0 : i64, scratch_operands = 1 : i64, tpu.core_type = #tpu.core_type<tc>, window_params = [{transform_indices = @transform_0, window_bounds = array<i64: 136, 1024>}, {transform_indices = @transform_1, window_bounds = array<i64: 1024, 128>}, {pipeline_mode = #tpu.pipeline_mode<synchronous>, transform_indices = @transform_2, window_bounds = array<i64: 8, 128>}]} {
    %c0 = arith.constant 0 : index
    %c0_0 = arith.constant 0 : index
    %0 = vector.load %arg1[%c0, %c0_0] : memref<136x1024xbf16, #tpu.memory_space<vmem>>, vector<136x1024xbf16>
    %c0_1 = arith.constant 0 : index
    %c0_2 = arith.constant 0 : index
    %1 = vector.load %arg2[%c0_1, %c0_2] : memref<1024x128xbf16, #tpu.memory_space<vmem>>, vector<1024x128xbf16>
    %cst = arith.constant dense<0.000000e+00> : vector<136x128xf32>
    %2 = tpu.matmul %0, %1, %cst {dimension_numbers = #tpu.dot_dimension_numbers<[1], [0], [0], [1], [0, 0, 1, 1], [], []>} : vector<136x1024xbf16>, vector<1024x128xbf16>, vector<136x128xf32> -> vector<136x128xf32>
    %c0_i32 = arith.constant 0 : i32
    %3 = arith.cmpi eq, %arg0, %c0_i32 : i32
    %4 = arith.extui %3 : i1 to i32
    %c0_i32_3 = arith.constant 0 : i32
    %5 = arith.cmpi ne, %4, %c0_i32_3 : i32
    scf.if %5 {
      %c0_8 = arith.constant 0 : index
      %c0_9 = arith.constant 0 : index
      %12 = vector.load %arg4[%c0_8, %c0_9] : memref<136x128xf32, #tpu.memory_space<vmem>>, vector<136x128xf32>
      tpu.vector_store %arg4[%c0_8, %c0_9], %2 {strides = array<i32>} : memref<136x128xf32, #tpu.memory_space<vmem>>, vector<136x128xf32>,
    } else {
    }
    %c0_i32_4 = arith.constant 0 : i32
    %6 = arith.cmpi sgt, %arg0, %c0_i32_4 : i32
    %7 = arith.extui %6 : i1 to i32
    %c0_i32_5 = arith.constant 0 : i32
    %8 = arith.cmpi ne, %7, %c0_i32_5 : i32
    scf.if %8 {
      %c0_8 = arith.constant 0 : index
      %c0_9 = arith.constant 0 : index
      %12 = vector.load %arg4[%c0_8, %c0_9] : memref<136x128xf32, #tpu.memory_space<vmem>>, vector<136x128xf32>
      %13 = arith.addf %12, %2 : vector<136x128xf32>
      %c0_10 = arith.constant 0 : index
      %c0_11 = arith.constant 0 : index
      %14 = vector.load %arg4[%c0_10, %c0_11] : memref<136x128xf32, #tpu.memory_space<vmem>>, vector<136x128xf32>
      tpu.vector_store %arg4[%c0_10, %c0_11], %13 {strides = array<i32>} : memref<136x128xf32, #tpu.memory_space<vmem>>, vector<136x128xf32>,
    } else {
    }
    %c0_i32_6 = arith.constant 0 : i32
    %9 = arith.cmpi eq, %arg0, %c0_i32_6 : i32
    %10 = arith.extui %9 : i1 to i32
    %c0_i32_7 = arith.constant 0 : i32
    %11 = arith.cmpi ne, %10, %c0_i32_7 : i32
    scf.if %11 {
      %c0_8 = arith.constant 0 : index
      %c0_9 = arith.constant 0 : index
      %12 = vector.load %arg4[%c0_8, %c0_9] : memref<136x128xf32, #tpu.memory_space<vmem>>, vector<136x128xf32>
      %13 = vector.extract_strided_slice %12 {offsets = [0, 0], sizes = [128, 128], strides = [1, 1]} : vector<136x128xf32> to vector<128x128xf32>
      %14 = vector.extract_strided_slice %12 {offsets = [128, 0], sizes = [8, 128], strides = [1, 1]} : vector<136x128xf32> to vector<8x128xf32>
      %15 = arith.mulf %14, %14 : vector<8x128xf32>
      %cst_10 = arith.constant dense<0.000000e+00> : vector<8xf32>
      %16 = vector.multi_reduction <add>, %15, %cst_10 [1] : vector<8x128xf32> to vector<8xf32>
      %17 = vector.shape_cast %16 : vector<8xf32> to vector<8x1xf32>
      %18 = arith.mulf %13, %13 : vector<128x128xf32>
      %cst_11 = arith.constant dense<0.000000e+00> : vector<128xf32>
      %19 = vector.multi_reduction <add>, %18, %cst_11 [1] : vector<128x128xf32> to vector<128xf32>
      %20 = vector.shape_cast %19 : vector<128xf32> to vector<128x1xf32>
      %cst_12 = arith.constant dense<0.000000e+00> : vector<8x128xf32>
      %21 = tpu.matmul %14, %13, %cst_12 {dimension_numbers = #tpu.dot_dimension_numbers<[1], [1], [0], [0], [0, 0, 1, 0], [], []>} : vector<8x128xf32>, vector<128x128xf32>, vector<8x128xf32> -> vector<8x128xf32>
      %22 = tpu.transpose %20, [1, 0] : vector<128x1xf32> -> vector<1x128xf32>
      %23 = vector.broadcast %17 : vector<8x1xf32> to vector<8x128xf32>
      %24 = vector.broadcast %22 : vector<1x128xf32> to vector<8x128xf32>
      %25 = arith.addf %23, %24 : vector<8x128xf32>
      %cst_13 = arith.constant 2.000000e+00 : f32
      %26 = vector.broadcast %cst_13 : f32 to vector<8x128xf32>
      %27 = arith.mulf %26, %21 : vector<8x128xf32>
      %28 = arith.subf %25, %27 : vector<8x128xf32>
      %cst_14 = arith.constant 0.000000e+00 : f32
      %29 = vector.broadcast %cst_14 : f32 to vector<8x128xf32>
      %30 = arith.maximumf %28, %29 : vector<8x128xf32>
      %31 = math.sqrt %30 : vector<8x128xf32>
      %cst_15 = arith.constant 0.000000e+00 : f32
      %32 = vector.broadcast %cst_15 : f32 to vector<8x128xf32>
      %33 = arith.subf %32, %31 : vector<8x128xf32>
      %c0_16 = arith.constant 0 : index
      %c0_17 = arith.constant 0 : index
      %34 = vector.load %arg3[%c0_16, %c0_17] : memref<8x128xf32, #tpu.memory_space<vmem>>, vector<8x128xf32>
      tpu.vector_store %arg3[%c0_16, %c0_17], %33 {strides = array<i32>} : memref<8x128xf32, #tpu.memory_space<vmem>>, vector<8x128xf32>,
    } else {
    }
    return
  }
  func.func @transform_0(%arg0: i32) -> (i32, i32) {
    %c0_i32 = arith.constant 0 : i32
    %c0_i32_0 = arith.constant 0 : i32
    return %c0_i32, %arg0 : i32, i32
  }
  func.func @transform_1(%arg0: i32) -> (i32, i32) {
    %c0_i32 = arith.constant 0 : i32
    %c0_i32_0 = arith.constant 0 : i32
    return %arg0, %c0_i32 : i32, i32
  }
  func.func @transform_2(%arg0: i32) -> (i32, i32) {
    %c0_i32 = arith.constant 0 : i32
    %c0_i32_0 = arith.constant 0 : i32
    %c0_i32_1 = arith.constant 0 : i32
    return %c0_i32, %c0_i32_0 : i32, i32
  }
}

</mosaic_0001>

<bundles_post_ra>
// kernel: _episode_forward.1
= control target key start
LH: loop header
LB: loop body
LE: loop exit
PB: predicated region body
PF: predicated region fallthrough
CT: control target
= control target key end

     0   :  { %s2717_s0 = inlined_call_operand.vmem [shape: bf16[136,1024], index: 0, kind: input, shape index: {}]   ;;  %s2718_s1 = inlined_call_operand.vmem [shape: bf16[1024,128], index: 1, kind: input, shape index: {}]   ;;  %s2719_s2 = inlined_call_operand.hbm [shape: f32[8,128], index: 2, kind: output, shape index: {}]  }
   0x1   :  { %v2133_v0 = vld [vmem:[%s2718_s1 + $0x40] sm:$0xff]   ;;  %v2137_v4 = vld [vmem:[%s2718_s1 + $0x48] sm:$0xff]   ;;  %v2141_v8 = vld [vmem:[%s2718_s1 + $0x50] sm:$0xff]  }
   0x2   :  { %v2134_v1 = vld [vmem:[%s2718_s1 + $0xc0] sm:$0xff]   ;;  %1773 = vmatprep.subr.bf16.mxu0 %v2133_v0  ;;  %v2138_v5 = vld [vmem:[%s2718_s1 + $0xc8] sm:$0xff]   ;;  %v2142_v9 = vld [vmem:[%s2718_s1 + $0xd0] sm:$0xff]  }
   0x3   :  { %v2135_v2 = vld [vmem:[%s2718_s1] sm:$0xff]   ;;  %1843 = vmatprep.subr.bf16.mxu1 %v2134_v1  ;;  %v2139_v6 = vld [vmem:[%s2718_s1 + $0x8] sm:$0xff]   ;;  %v2143_v10 = vld [vmem:[%s2718_s1 + $0x10] sm:$0xff]  }
   0x4   :  { %v2136_v3 = vld [vmem:[%s2718_s1 + $0x80] sm:$0xff]   ;;  %1774 = vmatpush3.bf16.msra.mxu0 %v2135_v2  ;;  %v2140_v7 = vld [vmem:[%s2718_s1 + $0x88] sm:$0xff]   ;;  %v2144_v11 = vld [vmem:[%s2718_s1 + $0x90] sm:$0xff]  }
   0x5   :  { %1844 = vmatpush3.bf16.msra.mxu1 %v2136_v3  ;;  %1775 = vmatprep.subr.bf16.mxu0 %v2137_v4  ;;  %v2145_v12 = vld [vmem:[%s2718_s1 + $0x58] sm:$0xff]   ;;  %v2149_v16 = vld [vmem:[%s2718_s1 + $0x60] sm:$0xff]   ;;  %v2153_v20 = vld [vmem:[%s2718_s1 + $0x68] sm:$0xff]  }
   0x6   :  { %1845 = vmatprep.subr.bf16.mxu1 %v2138_v5  ;;  %v2146_v13 = vld [vmem:[%s2718_s1 + $0xd8] sm:$0xff]   ;;  %v2150_v17 = vld [vmem:[%s2718_s1 + $0xe0] sm:$0xff]   ;;  %v2154_v21 = vld [vmem:[%s2718_s1 + $0xe8] sm:$0xff]  }
   0x7   :  { %v2147_v14 = vld [vmem:[%s2718_s1 + $0x18] sm:$0xff]   ;;  %v2151_v18 = vld [vmem:[%s2718_s1 + $0x20] sm:$0xff]   ;;  %v2155_v22 = vld [vmem:[%s2718_s1 + $0x28] sm:$0xff]  }
   0x8   :  { %1776 = vmatpush3.bf16.msra.mxu0 %v2139_v6  ;;  %v2148_v15 = vld [vmem:[%s2718_s1 + $0x98] sm:$0xff]   ;;  %v2152_v19 = vld [vmem:[%s2718_s1 + $0xa0] sm:$0xff]   ;;  %v2156_v23 = vld [vmem:[%s2718_s1 + $0xa8] sm:$0xff]  }
   0x9   :  { %1846 = vmatpush3.bf16.msra.mxu1 %v2140_v7  ;;  %1777 = vmatprep.subr.bf16.mxu0 %v2141_v8  ;;  %v2157_v24 = vld [vmem:[%s2718_s1 + $0x70] sm:$0xff]   ;;  %v2161_v28 = vld [vmem:[%s2718_s1 + $0x78] sm:$0xff]   ;;  %v13_v32 = vld [vmem:[%s2717_s0] sm:$0xff] }
   0xa   :  { %1847 = vmatprep.subr.bf16.mxu1 %v2142_v9  ;;  %v2158_v25 = vld [vmem:[%s2718_s1 + $0xf0] sm:$0xff]   ;;  %v2162_v29 = vld [vmem:[%s2718_s1 + $0xf8] sm:$0xff]   ;;  %v17_v33 = vld [vmem:[%s2717_s0 + $0x20] sm:$0xff] }
   0xb   :  { %v2159_v26 = vld [vmem:[%s2718_s1 + $0x30] sm:$0xff]   ;;  %v2163_v30 = vld [vmem:[%s2718_s1 + $0x38] sm:$0xff]   ;;  %v14_v34 = vld [vmem:[%s2717_s0 + $0x8] sm:$0xff]  ;;  %v1637_v35 = vcombine.low %v13_v32, %v17_v33  ;;  %v1638_v36 = vcombine.high %v13_v32, %v17_v33 }
   0xc   :  { %1778 = vmatpush3.bf16.msra.mxu0 %v2143_v10  ;;  %v2160_v27 = vld [vmem:[%s2718_s1 + $0xb0] sm:$0xff]   ;;  %v2164_v31 = vld [vmem:[%s2718_s1 + $0xb8] sm:$0xff]   ;;  %v18_v37 = vld [vmem:[%s2717_s0 + $0x28] sm:$0xff] }
   0xd   :  { %1848 = vmatpush3.bf16.msra.mxu1 %v2144_v11  ;;  %1779 = vmatprep.subr.bf16.mxu0 %v2145_v12  ;;  %v21_v38 = vld [vmem:[%s2717_s0 + $0x40] sm:$0xff]  ;;  %v1639_v40 = vcombine.low %v14_v34, %v18_v37  ;;  %v1640_v41 = vcombine.high %v14_v34, %v18_v37  ;;  %v22_v43 = vld [vmem:[%s2717_s0 + $0x48] sm:$0xff]  ;;  %v2173_v2 = vld [vmem:[%s2718_s1 + $0x150] sm:$0xff]  }
   0xe   :  { %1849 = vmatprep.subr.bf16.mxu1 %v2146_v13  ;;  %v25_v39 = vld [vmem:[%s2717_s0 + $0x60] sm:$0xff]  ;;  %v26_v44 = vld [vmem:[%s2717_s0 + $0x68] sm:$0xff]  ;;  %973 = vmatprep.mubr.bf16.mxu0 %v1638_v36  ;;  %v2174_v3 = vld [vmem:[%s2718_s1 + $0x110] sm:$0xff]  }
   0xf   :  { %v1646_v42 = vcombine.high %v21_v38, %v25_v39  ;;  %v1648_v45 = vcombine.high %v22_v43, %v26_v44  ;;  %v2165_v46 = vld [vmem:[%s2718_s1 + $0x140] sm:$0xff]   ;;  %1077 = vmatprep.mubr.bf16.mxu1 %v1640_v41  ;;  %v30_v52 = vld [vmem:[%s2717_s0 + $0x88] sm:$0xff]  ;;  %v1645_v54 = vcombine.low %v21_v38, %v25_v39  ;;  %v1647_v56 = vcombine.low %v22_v43, %v26_v44  ;;  %v2175_v5 = vld [vmem:[%s2718_s1 + $0x1d0] sm:$0xff]  }
  0x10   :  { %1780 = vmatpush3.bf16.msra.mxu0 %v2147_v14  ;;  %v2166_v47 = vld [vmem:[%s2718_s1 + $0x100] sm:$0xff]   ;;  %v34_v53 = vld [vmem:[%s2717_s0 + $0xa8] sm:$0xff]  ;;  %v2176_v8 = vld [vmem:[%s2718_s1 + $0x190] sm:$0xff]  }
  0x11   :  { %1850 = vmatpush3.bf16.msra.mxu1 %v2148_v15  ;;  %1781 = vmatprep.subr.bf16.mxu0 %v2149_v16  ;;  %v2167_v48 = vld [vmem:[%s2718_s1 + $0x1c0] sm:$0xff]   ;;  %v2169_v55 = vld [vmem:[%s2718_s1 + $0x148] sm:$0xff]   ;;  %v1656_v59 = vcombine.high %v30_v52, %v34_v53  ;;  %v1655_v6 = vcombine.low %v30_v52, %v34_v53  ;;  %v2177_v10 = vld [vmem:[%s2718_s1 + $0x158] sm:$0xff]  }
  0x12   :  { %1851 = vmatprep.subr.bf16.mxu1 %v2150_v17  ;;  %v2168_v49 = vld [vmem:[%s2718_s1 + $0x180] sm:$0xff]   ;;  %v2170_v58 = vld [vmem:[%s2718_s1 + $0x108] sm:$0xff]   ;;  %v2178_v12 = vld [vmem:[%s2718_s1 + $0x118] sm:$0xff]  }
  0x13   :  { %v29_v50 = vld [vmem:[%s2717_s0 + $0x80] sm:$0xff]  ;;  %v2171_v60 = vld [vmem:[%s2718_s1 + $0x1c8] sm:$0xff]   ;;  %v2179_v13 = vld [vmem:[%s2718_s1 + $0x1d8] sm:$0xff]  }
  0x14   :  { %1782 = vmatpush3.bf16.msra.mxu0 %v2151_v18  ;;  %v33_v51 = vld [vmem:[%s2717_s0 + $0xa0] sm:$0xff]  ;;  %v2172_v61 = vld [vmem:[%s2718_s1 + $0x188] sm:$0xff]   ;;  %v2180_v15 = vld [vmem:[%s2718_s1 + $0x198] sm:$0xff]  }
  0x15   :  { %1852 = vmatpush3.bf16.msra.mxu1 %v2152_v19  ;;  %1783 = vmatprep.subr.bf16.mxu0 %v2153_v20  ;;  %v1654_v57 = vcombine.high %v29_v50, %v33_v51  ;;  %v37_v62 = vld [vmem:[%s2717_s0 + $0xc0] sm:$0xff]  ;;  %v38_v0 = vld [vmem:[%s2717_s0 + $0xc8] sm:$0xff]  ;;  %v1653_v4 = vcombine.low %v29_v50, %v33_v51  ;;  %v2189_v38 = vld [vmem:[%s2718_s1 + $0x170] sm:$0xff]  }
  0x16   :  { %1853 = vmatprep.subr.bf16.mxu1 %v2154_v21  ;;  %v41_v63 = vld [vmem:[%s2717_s0 + $0xe0] sm:$0xff]  ;;  %v42_v1 = vld [vmem:[%s2717_s0 + $0xe8] sm:$0xff]  ;;  %v2192_v43 = vld [vmem:[%s2718_s1 + $0x130] sm:$0xff]  }
  0x17   :  { %v1662_v7 = vcombine.high %v37_v62, %v41_v63  ;;  %v1664_v9 = vcombine.high %v38_v0, %v42_v1  ;;  %v45_v11 = vld [vmem:[%s2717_s0 + $0x100] sm:$0xff]  ;;  %v46_v16 = vld [vmem:[%s2717_s0 + $0x108] sm:$0xff]  ;;  %v1661_v18 = vcombine.low %v37_v62, %v41_v63  ;;  %v1663_v20 = vcombine.low %v38_v0, %v42_v1  ;;  %v2195_v44 = vld [vmem:[%s2718_s1 + $0x1f0] sm:$0xff]  }
  0x18   :  { %1784 = vmatpush3.bf16.msra.mxu0 %v2155_v22  ;;  %v49_v14 = vld [vmem:[%s2717_s0 + $0x120] sm:$0xff]  ;;  %v50_v17 = vld [vmem:[%s2717_s0 + $0x128] sm:$0xff]  ;;  %v2198_v50 = vld [vmem:[%s2718_s1 + $0x1f8] sm:$0xff]  }
  0x19   :  { %1854 = vmatpush3.bf16.msra.mxu1 %v2156_v23  ;;  %1785 = vmatprep.subr.bf16.mxu0 %v2157_v24  ;;  %v2181_v19 = vld [vmem:[%s2718_s1 + $0x160] sm:$0xff]   ;;  %v1670_v21 = vcombine.high %v45_v11, %v49_v14  ;;  %v1672_v23 = vcombine.high %v46_v16, %v50_v17  ;;  %v1669_v32 = vcombine.low %v45_v11, %v49_v14  ;;  %v2188_v37 = vld [vmem:[%s2718_s1 + $0x1a8] sm:$0xff]   ;;  %v2199_v52 = vld [vmem:[%s2718_s1 + $0x138] sm:$0xff]  }
  0x1a   :  { %1855 = vmatprep.subr.bf16.mxu1 %v2158_v25  ;;  %v2182_v22 = vld [vmem:[%s2718_s1 + $0x120] sm:$0xff]   ;;  %v1671_v33 = vcombine.low %v46_v16, %v50_v17  ;;  %v62_v41 = vld [vmem:[%s2717_s0 + $0x188] sm:$0xff]  ;;  %v2200_v53 = vld [vmem:[%s2718_s1 + $0x1b8] sm:$0xff]  }
  0x1b   :  { %v2183_v24 = vld [vmem:[%s2718_s1 + $0x1e0] sm:$0xff]  }
  0x1c   :  { %1786 = vmatpush3.bf16.msra.mxu0 %v2159_v26  ;;  %v53_v25 = vld [vmem:[%s2717_s0 + $0x140] sm:$0xff] }
  0x1d   :  { %1856 = vmatpush3.bf16.msra.mxu1 %v2160_v27  ;;  %1787 = vmatprep.subr.bf16.mxu0 %v2161_v28  ;;  %v57_v26 = vld [vmem:[%s2717_s0 + $0x160] sm:$0xff]  ;;  %v2185_v28 = vld [vmem:[%s2718_s1 + $0x168] sm:$0xff]  }
  0x1e   :  { %1857 = vmatprep.subr.bf16.mxu1 %v2162_v29  ;;  %v2184_v27 = vld [vmem:[%s2718_s1 + $0x1a0] sm:$0xff]   ;;  %v54_v29 = vld [vmem:[%s2717_s0 + $0x148] sm:$0xff]  ;;  %v1678_v34 = vcombine.high %v53_v25, %v57_v26 }
  0x1f   :  { %v61_v39 = vld [vmem:[%s2717_s0 + $0x180] sm:$0xff] }
  0x20   :  { %1788 = vmatpush3.bf16.msra.mxu0 %v2163_v30  ;;  %v58_v30 = vld [vmem:[%s2717_s0 + $0x168] sm:$0xff]  ;;  %v77_v62 = vld [vmem:[%s2717_s0 + $0x200] sm:$0xff] }
  0x21   :  { %1858 = vmatpush3.bf16.msra.mxu1 %v2164_v31  ;;  %1913 = vmatprep.subr.bf16.mxu0 %v2165_v46  ;;  %v2186_v31 = vld [vmem:[%s2718_s1 + $0x128] sm:$0xff]   ;;  %v1680_v36 = vcombine.high %v54_v29, %v58_v30  ;;  %v1677_v46 = vcombine.low %v53_v25, %v57_v26 }
  0x22   :  { %1983 = vmatprep.subr.bf16.mxu1 %v2167_v48  ;;  %v1679_v48 = vcombine.low %v54_v29, %v58_v30 }
  0x23   :  { %974 = vmatmul.mubr.bf16.vlgmr.msra.gmra.mrb[0].mxu0 %v1637_v35  ;;  %v2187_v35 = vld [vmem:[%s2718_s1 + $0x1e8] sm:$0xff]  }
  0x24   :  { %1078 = vmatmul.mubr.bf16.vlgmr.msra.gmra.mrb[0].mxu1 %v1639_v40  ;;  %981 = vmatprep.mubr.bf16.mxu0 %v1646_v42  ;;  %v65_v40 = vld [vmem:[%s2717_s0 + $0x1a0] sm:$0xff]  ;;  %v66_v42 = vld [vmem:[%s2717_s0 + $0x1a8] sm:$0xff] }
  0x25   :  { %1085 = vmatprep.mubr.bf16.mxu1 %v1648_v45  ;;  %1914 = vmatpush3.bf16.msra.mxu0 %v2166_v47  ;;  %v2196_v45 = vld [vmem:[%s2718_s1 + $0x1b0] sm:$0xff]   ;;  %v2197_v47 = vld [vmem:[%s2718_s1 + $0x178] sm:$0xff]   ;;  %v1688_v51 = vcombine.high %v62_v41, %v66_v42 }
  0x26   :  { %1984 = vmatpush3.bf16.msra.mxu1 %v2168_v49  ;;  %1915 = vmatprep.subr.bf16.mxu0 %v2169_v55  ;;  %v1686_v49 = vcombine.high %v61_v39, %v65_v40  ;;  %v73_v55 = vld [vmem:[%s2717_s0 + $0x1e0] sm:$0xff] }
  0x27   :  { %1985 = vmatprep.subr.bf16.mxu1 %v2171_v60 }
  0x29   :  { %1916 = vmatpush3.bf16.msra.mxu0 %v2170_v58  ;;  %v1685_v58 = vcombine.low %v61_v39, %v65_v40 }
  0x2a   :  { %1986 = vmatpush3.bf16.msra.mxu1 %v2172_v61  ;;  %1917 = vmatprep.subr.bf16.mxu0 %v2173_v2 }
  0x2b   :  { %982 = vmatmul.mubr.bf16.gmra.mrb[4].mxu0 %v1645_v54  ;;  %1987 = vmatprep.subr.bf16.mxu1 %v2175_v5  ;;  %v69_v54 = vld [vmem:[%s2717_s0 + $0x1c0] sm:$0xff] }
  0x2c   :  { %1086 = vmatmul.mubr.bf16.gmra.mrb[4].mxu1 %v1647_v56  ;;  %989 = vmatprep.mubr.bf16.mxu0 %v1654_v57  ;;  %v70_v56 = vld [vmem:[%s2717_s0 + $0x1c8] sm:$0xff]  ;;  %v1694_v60 = vcombine.high %v69_v54, %v73_v55 }
  0x2d   :  { %1093 = vmatprep.mubr.bf16.mxu1 %v1656_v59  ;;  %1918 = vmatpush3.bf16.msra.mxu0 %v2174_v3  ;;  %v74_v57 = vld [vmem:[%s2717_s0 + $0x1e8] sm:$0xff]  ;;  %v1687_v59 = vcombine.low %v62_v41, %v66_v42 }
  0x2e   :  { %1988 = vmatpush3.bf16.msra.mxu1 %v2176_v8  ;;  %1919 = vmatprep.subr.bf16.mxu0 %v2177_v10  ;;  %v1696_v61 = vcombine.high %v70_v56, %v74_v57 }
  0x2f   :  { %1989 = vmatprep.subr.bf16.mxu1 %v2179_v13 }
  0x31   :  { %1920 = vmatpush3.bf16.msra.mxu0 %v2178_v12 }
  0x32   :  { %1990 = vmatpush3.bf16.msra.mxu1 %v2180_v15  ;;  %1921 = vmatprep.subr.bf16.mxu0 %v2181_v19 }
  0x33   :  { %990 = vmatmul.mubr.bf16.gmra.mrb[8].mxu0 %v1653_v4  ;;  %1991 = vmatprep.subr.bf16.mxu1 %v2183_v24 }
  0x34   :  { %1094 = vmatmul.mubr.bf16.gmra.mrb[8].mxu1 %v1655_v6  ;;  %997 = vmatprep.mubr.bf16.mxu0 %v1662_v7 }
  0x35   :  { %1101 = vmatprep.mubr.bf16.mxu1 %v1664_v9  ;;  %1922 = vmatpush3.bf16.msra.mxu0 %v2182_v22 }
  0x36   :  { %1992 = vmatpush3.bf16.msra.mxu1 %v2184_v27  ;;  %1923 = vmatprep.subr.bf16.mxu0 %v2185_v28 }
  0x37   :  { %1993 = vmatprep.subr.bf16.mxu1 %v2187_v35 }
  0x39   :  { %1924 = vmatpush3.bf16.msra.mxu0 %v2186_v31 }
  0x3a   :  { %1994 = vmatpush3.bf16.msra.mxu1 %v2188_v37  ;;  %1925 = vmatprep.subr.bf16.mxu0 %v2189_v38 }
  0x3b   :  { %998 = vmatmul.mubr.bf16.gmra.mrb[12].mxu0 %v1661_v18  ;;  %1995 = vmatprep.subr.bf16.mxu1 %v2195_v44 }
  0x3c   :  { %1102 = vmatmul.mubr.bf16.gmra.mrb[12].mxu1 %v1663_v20  ;;  %1005 = vmatprep.mubr.bf16.mxu0 %v1670_v21 }
  0x3d   :  { %1109 = vmatprep.mubr.bf16.mxu1 %v1672_v23  ;;  %1926 = vmatpush3.bf16.msra.mxu0 %v2192_v43 }
  0x3e   :  { %1996 = vmatpush3.bf16.msra.mxu1 %v2196_v45  ;;  %1927 = vmatprep.subr.bf16.mxu0 %v2197_v47 }
  0x3f   :  { %1997 = vmatprep.subr.bf16.mxu1 %v2198_v50 }
  0x41   :  { %1928 = vmatpush3.bf16.msra.mxu0 %v2199_v52 }
  0x42   :  { %1998 = vmatpush3.bf16.msra.mxu1 %v2200_v53 }
  0x43   :  { %1006 = vmatmul.mubr.bf16.gmra.mrb[16].mxu0 %v1669_v32 }
  0x44   :  { %1110 = vmatmul.mubr.bf16.gmra.mrb[16].mxu1 %v1671_v33  ;;  %1013 = vmatprep.mubr.bf16.mxu0 %v1678_v34 }
  0x45   :  { %1117 = vmatprep.mubr.bf16.mxu1 %v1680_v36 }
  0x4b   :  { %1014 = vmatmul.mubr.bf16.gmra.mrb[20].mxu0 %v1677_v46 }
  0x4c   :  { %1118 = vmatmul.mubr.bf16.gmra.mrb[20].mxu1 %v1679_v48  ;;  %1021 = vmatprep.mubr.bf16.mxu0 %v1686_v49 }
  0x4d   :  { %1125 = vmatprep.mubr.bf16.mxu1 %v1688_v51 }
  0x53   :  { %1022 = vmatmul.mubr.bf16.gmra.mrb[24].mxu0 %v1685_v58 }
  0x54   :  { %1126 = vmatmul.mubr.bf16.gmra.mrb[24].mxu1 %v1687_v59  ;;  %1029 = vmatprep.mubr.bf16.mxu0 %v1694_v60 }
  0x55   :  { %1133 = vmatprep.mubr.bf16.mxu1 %v1696_v61 }
  0x56   :  { %7 = vsyncpa [#allocation4], 0  ;;  %v78_v63 = vld [vmem:[%s2717_s0 + $0x208] sm:$0xff]  ;;  %v1693_v0 = vcombine.low %v69_v54, %v73_v55  ;;  %v1695_v1 = vcombine.low %v70_v56, %v74_v57  ;;  %v1702_v2 = vcombine.high %v77_v62, %v77_v62  ;;  %v15_v4 = vld [vmem:[%s2717_s0 + $0x10] sm:$0xff]  ;;  %v1701_v8 = vcombine.low %v77_v62, %v77_v62 }
  0x57   :  { %v1704_v3 = vcombine.high %v78_v63, %v78_v63  ;;  %v19_v5 = vld [vmem:[%s2717_s0 + $0x30] sm:$0xff]  ;;  %v16_v6 = vld [vmem:[%s2717_s0 + $0x18] sm:$0xff]  ;;  %v1703_v9 = vcombine.low %v78_v63, %v78_v63  ;;  %vm2232_vm0 = vmmov 0  }
  0x58   :  { %v20_v7 = vld [vmem:[%s2717_s0 + $0x38] sm:$0xff]  ;;  %v1642_v10 = vcombine.high %v15_v4, %v19_v5  ;;  %v23_v12 = vld [vmem:[%s2717_s0 + $0x50] sm:$0xff]  ;;  %v1641_v16 = vcombine.low %v15_v4, %v19_v5 }
  0x59   :  { %v1644_v11 = vcombine.high %v16_v6, %v20_v7  ;;  %v27_v13 = vld [vmem:[%s2717_s0 + $0x70] sm:$0xff]  ;;  %v24_v14 = vld [vmem:[%s2717_s0 + $0x58] sm:$0xff]  ;;  %v1643_v17 = vcombine.low %v16_v6, %v20_v7 }
  0x5a   :  { %v28_v15 = vld [vmem:[%s2717_s0 + $0x78] sm:$0xff]  ;;  %v1650_v18 = vcombine.high %v23_v12, %v27_v13  ;;  %v31_v20 = vld [vmem:[%s2717_s0 + $0x90] sm:$0xff]  ;;  %v1649_v24 = vcombine.low %v23_v12, %v27_v13  ;;  %v2231_v12 = vmov 0.0|0.0  }
  0x5b   :  { %1030 = vmatmul.mubr.bf16.gmra.mrb[28].mxu0 %v1693_v0  ;;  %v1652_v19 = vcombine.high %v24_v14, %v28_v15  ;;  %v35_v21 = vld [vmem:[%s2717_s0 + $0xb0] sm:$0xff]  ;;  %v32_v22 = vld [vmem:[%s2717_s0 + $0x98] sm:$0xff]  ;;  %v1651_v25 = vcombine.low %v24_v14, %v28_v15  ;;  %2105 = vmatprep.subr.bf16.mxu0 %v2231_v12 }
  0x5c   :  { %1134 = vmatmul.mubr.bf16.gmra.mrb[28].mxu1 %v1695_v1  ;;  %1037 = vmatprep.mubr.bf16.mxu0 %v1702_v2  ;;  %v36_v23 = vld [vmem:[%s2717_s0 + $0xb8] sm:$0xff]  ;;  %v1658_v26 = vcombine.high %v31_v20, %v35_v21  ;;  %v39_v28 = vld [vmem:[%s2717_s0 + $0xd0] sm:$0xff]  ;;  %v1657_v32 = vcombine.low %v31_v20, %v35_v21 }
  0x5d   :  { %1141 = vmatprep.mubr.bf16.mxu1 %v1704_v3  ;;  %v1660_v27 = vcombine.high %v32_v22, %v36_v23  ;;  %v43_v29 = vld [vmem:[%s2717_s0 + $0xf0] sm:$0xff]  ;;  %v40_v30 = vld [vmem:[%s2717_s0 + $0xd8] sm:$0xff]  ;;  %v1659_v33 = vcombine.low %v32_v22, %v36_v23 }
  0x5e   :  { %v44_v31 = vld [vmem:[%s2717_s0 + $0xf8] sm:$0xff]  ;;  %v1666_v34 = vcombine.high %v39_v28, %v43_v29  ;;  %v47_v36 = vld [vmem:[%s2717_s0 + $0x110] sm:$0xff]  ;;  %v1665_v40 = vcombine.low %v39_v28, %v43_v29 }
  0x5f   :  { %v1668_v35 = vcombine.high %v40_v30, %v44_v31  ;;  %v51_v37 = vld [vmem:[%s2717_s0 + $0x130] sm:$0xff]  ;;  %v48_v38 = vld [vmem:[%s2717_s0 + $0x118] sm:$0xff]  ;;  %v1667_v41 = vcombine.low %v40_v30, %v44_v31 }
  0x60   :  { %v52_v39 = vld [vmem:[%s2717_s0 + $0x138] sm:$0xff]  ;;  %v1674_v42 = vcombine.high %v47_v36, %v51_v37  ;;  %v55_v44 = vld [vmem:[%s2717_s0 + $0x150] sm:$0xff]  ;;  %v1673_v48 = vcombine.low %v47_v36, %v51_v37 }
  0x61   :  { %v1676_v43 = vcombine.high %v48_v38, %v52_v39  ;;  %v59_v45 = vld [vmem:[%s2717_s0 + $0x170] sm:$0xff]  ;;  %v56_v46 = vld [vmem:[%s2717_s0 + $0x158] sm:$0xff]  ;;  %v1675_v49 = vcombine.low %v48_v38, %v52_v39 }
  0x62   :  { %v60_v47 = vld [vmem:[%s2717_s0 + $0x178] sm:$0xff]  ;;  %v1682_v50 = vcombine.high %v55_v44, %v59_v45  ;;  %v63_v52 = vld [vmem:[%s2717_s0 + $0x190] sm:$0xff]  ;;  %v1681_v56 = vcombine.low %v55_v44, %v59_v45 }
  0x63   :  { %1038 = vmatmul.mubr.bf16.gmra.mrb[32].mxu0 %v1701_v8  ;;  %v1684_v51 = vcombine.high %v56_v46, %v60_v47  ;;  %v67_v53 = vld [vmem:[%s2717_s0 + $0x1b0] sm:$0xff]  ;;  %v64_v54 = vld [vmem:[%s2717_s0 + $0x198] sm:$0xff]  ;;  %v1683_v57 = vcombine.low %v56_v46, %v60_v47 }
  0x64   :  { %1142 = vmatmul.mubr.bf16.gmra.mrb[32].mxu1 %v1703_v9  ;;  %1181 = vmatprep.mubr.bf16.mxu0 %v1642_v10  ;;  %v68_v55 = vld [vmem:[%s2717_s0 + $0x1b8] sm:$0xff]  ;;  %v1690_v58 = vcombine.high %v63_v52, %v67_v53  ;;  %v71_v60 = vld [vmem:[%s2717_s0 + $0x1d0] sm:$0xff]  ;;  %v1689_v0 = vcombine.low %v63_v52, %v67_v53 }
  0x65   :  { %1285 = vmatprep.mubr.bf16.mxu1 %v1644_v11  ;;  %v1692_v59 = vcombine.high %v64_v54, %v68_v55  ;;  %v75_v61 = vld [vmem:[%s2717_s0 + $0x1f0] sm:$0xff]  ;;  %v72_v62 = vld [vmem:[%s2717_s0 + $0x1d8] sm:$0xff]  ;;  %v1691_v1 = vcombine.low %v64_v54, %v68_v55 }
  0x66   :  { %v76_v63 = vld [vmem:[%s2717_s0 + $0x1f8] sm:$0xff]  ;;  %v1698_v2 = vcombine.high %v71_v60, %v75_v61  ;;  %v79_v4 = vld [vmem:[%s2717_s0 + $0x210] sm:$0xff]  ;;  %v1697_v6 = vcombine.low %v71_v60, %v75_v61 }
  0x67   :  { %v1700_v3 = vcombine.high %v72_v62, %v76_v63  ;;  %v80_v5 = vld [vmem:[%s2717_s0 + $0x218] sm:$0xff]  ;;  %v1699_v7 = vcombine.low %v72_v62, %v76_v63  ;;  %v1706_v8 = vcombine.high %v79_v4, %v79_v4  ;;  %v1705_v10 = vcombine.low %v79_v4, %v79_v4  ;;  %s2234_s0 = smov [#allocation3]  }
  0x68   :  { %v1708_v9 = vcombine.high %v80_v5, %v80_v5  ;;  %v1707_v11 = vcombine.low %v80_v5, %v80_v5  ;;  %s1629_s18 = sshll.u32 %s2234_s0, 4  ;;  %s1630_s18 = int_to_ptr.vmem [resolvable:$true] %s1629_s18 }
  0x69   :  { %s2207_s19 = scalar_lea.vmem %s1630_s18, 128  ;;  %p2212_p1 = scmp.lt.s32.totalorder %s1630_s18, %s1630_s18 }
  0x6a   :  { %p2208_p0 = scmp.ne.s32.totalorder %s1630_s18, %s2207_s19  ;;  %p2213_p2 = scmp.lt.s32.totalorder %s2207_s19, %s2207_s19 }
  0x6b   :  { %1182 = vmatmul.mubr.bf16.vlgmr.msra.gmra.mrb[36].mxu0 %v1641_v16 }
  0x6c   :  { %1286 = vmatmul.mubr.bf16.vlgmr.msra.gmra.mrb[36].mxu1 %v1643_v17  ;;  %1189 = vmatprep.mubr.bf16.mxu0 %v1650_v18  ;;  %p2214_p3 = por %p2213_p2, %p2212_p1 }
  0x6d   :  { %1293 = vmatprep.mubr.bf16.mxu1 %v1652_v19 }
  0x6e   :  { %p2215_p4 = pnand %p2214_p3, %p2208_p0 }
  0x73   :  { %1190 = vmatmul.mubr.bf16.gmra.mrb[40].mxu0 %v1649_v24 }
  0x74   :  { %1294 = vmatmul.mubr.bf16.gmra.mrb[40].mxu1 %v1651_v25  ;;  %1197 = vmatprep.mubr.bf16.mxu0 %v1658_v26 }
  0x75   :  { %1301 = vmatprep.mubr.bf16.mxu1 %v1660_v27 }
  0x7b   :  { %1198 = vmatmul.mubr.bf16.gmra.mrb[44].mxu0 %v1657_v32 }
  0x7c   :  { %1302 = vmatmul.mubr.bf16.gmra.mrb[44].mxu1 %v1659_v33  ;;  %1205 = vmatprep.mubr.bf16.mxu0 %v1666_v34 }
  0x7d   :  { %1309 = vmatprep.mubr.bf16.mxu1 %v1668_v35 }
  0x83   :  { %1206 = vmatmul.mubr.bf16.gmra.mrb[48].mxu0 %v1665_v40 }
  0x84   :  { %1310 = vmatmul.mubr.bf16.gmra.mrb[48].mxu1 %v1667_v41  ;;  %1213 = vmatprep.mubr.bf16.mxu0 %v1674_v42  ;;  %v2233_v41 = vmov 0.0  }
  0x85   :  { %1317 = vmatprep.mubr.bf16.mxu1 %v1676_v43 }
  0x8b   :  { %1214 = vmatmul.mubr.bf16.gmra.mrb[52].mxu0 %v1673_v48 }
  0x8c   :  { %1318 = vmatmul.mubr.bf16.gmra.mrb[52].mxu1 %v1675_v49  ;;  %1221 = vmatprep.mubr.bf16.mxu0 %v1682_v50 }
  0x8d   :  { %1325 = vmatprep.mubr.bf16.mxu1 %v1684_v51 }
  0x93   :  { %1222 = vmatmul.mubr.bf16.gmra.mrb[56].mxu0 %v1681_v56 }
  0x94   :  { %1326 = vmatmul.mubr.bf16.gmra.mrb[56].mxu1 %v1683_v57  ;;  %1229 = vmatprep.mubr.bf16.mxu0 %v1690_v58 }
  0x95   :  { %1333 = vmatprep.mubr.bf16.mxu1 %v1692_v59 }
  0x9b   :  { %1230 = vmatmul.mubr.bf16.gmra.mrb[60].mxu0 %v1689_v0 }
  0x9c   :  { %1334 = vmatmul.mubr.bf16.gmra.mrb[60].mxu1 %v1691_v1  ;;  %1237 = vmatprep.mubr.bf16.mxu0 %v1698_v2 }
  0x9d   :  { %1341 = vmatprep.mubr.bf16.mxu1 %v1700_v3 }
  0xa3   :  { %1238 = vmatmul.mubr.bf16.gmra.mrb[64].mxu0 %v1697_v6 }
  0xa4   :  { %1342 = vmatmul.mubr.bf16.gmra.mrb[64].mxu1 %v1699_v7  ;;  %1245 = vmatprep.mubr.bf16.mxu0 %v1706_v8 }
  0xa5   :  { %1349 = vmatprep.mubr.bf16.mxu1 %v1708_v9 }
  0xab   :  { %1246 = vmatmul.mubr.bf16.gmra.mrb[68].mxu0 %v1705_v10 }
  0xac   :  { %1350 = vmatmul.mubr.bf16.gmra.mrb[68].mxu1 %v1707_v11  ;;  %2102 = vmatprep.mubr.msk.f32.mxu0 %vm2232_vm0, %v2233_v41 }
  0xf6   :  { %v1789_v13 = vpop.f32.mrb[0].mxu0 }
  0xf7   :  { %v1859_v14 = vpop.f32.mrb[0].mxu1  ;;  %v1790_v15 = vpop.f32.mrb[1].mxu0 }
  0xf8   :  { %v1791_v16 = vadd.f32 %v1790_v15, %v1789_v13  ;;  %v1860_v17 = vpop.f32.mrb[1].mxu1  ;;  %v1792_v18 = vpop.f32.mrb[2].mxu0 }
  0xf9   :  { %v1861_v19 = vadd.f32 %v1860_v17, %v1859_v14  ;;  %v1862_v20 = vpop.f32.mrb[2].mxu1  ;;  %v1793_v21 = vpop.f32.mrb[3].mxu0 }
  0xfa   :  { %v1794_v22 = vadd.f32 %v1793_v21, %v1792_v18  ;;  %v1863_v23 = vpop.f32.mrb[3].mxu1 }
  0xfb   :  { %v2647_v24 = vadd.f32 %v1861_v19, %v1791_v16  ;;  %v1864_v25 = vadd.f32 %v1863_v23, %v1862_v20 }
  0xfd   :  { %v2649_v26 = vadd.f32 %v1864_v25, %v1794_v22 }
  0xfe   :  { %v1795_v27 = vpop.f32.mrb[4].mxu0 }
  0xff   :  { %v1865_v28 = vpop.f32.mrb[4].mxu1  ;;  %v1796_v29 = vpop.f32.mrb[5].mxu0 }
 0x100   :  { %v1797_v30 = vadd.f32 %v1796_v29, %v1795_v27  ;;  %v1866_v31 = vpop.f32.mrb[5].mxu1  ;;  %v1798_v32 = vpop.f32.mrb[6].mxu0 }
 0x101   :  { %v1867_v33 = vadd.f32 %v1866_v31, %v1865_v28  ;;  %v1868_v34 = vpop.f32.mrb[6].mxu1  ;;  %v1799_v35 = vpop.f32.mrb[7].mxu0 }
 0x102   :  { %v1800_v36 = vadd.f32 %v1799_v35, %v1798_v32  ;;  %v1869_v37 = vpop.f32.mrb[7].mxu1 }
 0x103   :  { %v2651_v38 = vadd.f32 %v1867_v33, %v1797_v30  ;;  %v1870_v39 = vadd.f32 %v1869_v37, %v1868_v34 }
 0x105   :  { %v2653_v40 = vadd.f32 %v1870_v39, %v1800_v36 }
 0x106   :  { %v1801_v42 = vpop.f32.mrb[8].mxu0 }
 0x107   :  { %v1871_v43 = vpop.f32.mrb[8].mxu1  ;;  %v1802_v44 = vpop.f32.mrb[9].mxu0 }
 0x108   :  { %v1803_v45 = vadd.f32 %v1802_v44, %v1801_v42  ;;  %v1872_v46 = vpop.f32.mrb[9].mxu1  ;;  %v1804_v47 = vpop.f32.mrb[10].mxu0 }
 0x109   :  { %v1873_v48 = vadd.f32 %v1872_v46, %v1871_v43  ;;  %v1874_v49 = vpop.f32.mrb[10].mxu1  ;;  %v1805_v50 = vpop.f32.mrb[11].mxu0 }
 0x10a   :  { %v1806_v51 = vadd.f32 %v1805_v50, %v1804_v47  ;;  %v1875_v52 = vpop.f32.mrb[11].mxu1 }
 0x10b   :  { %v2655_v53 = vadd.f32 %v1873_v48, %v1803_v45  ;;  %v1876_v54 = vadd.f32 %v1875_v52, %v1874_v49 }
 0x10d   :  { %v2657_v55 = vadd.f32 %v1876_v54, %v1806_v51 }
 0x10e   :  { %v1807_v56 = vpop.f32.mrb[12].mxu0 }
 0x10f   :  { %v1877_v57 = vpop.f32.mrb[12].mxu1  ;;  %v1808_v58 = vpop.f32.mrb[13].mxu0 }
 0x110   :  { %v1809_v59 = vadd.f32 %v1808_v58, %v1807_v56  ;;  %v1878_v60 = vpop.f32.mrb[13].mxu1  ;;  %v1810_v61 = vpop.f32.mrb[14].mxu0 }
 0x111   :  { %v1879_v62 = vadd.f32 %v1878_v60, %v1877_v57  ;;  %v1880_v63 = vpop.f32.mrb[14].mxu1  ;;  %v1811_v0 = vpop.f32.mrb[15].mxu0 }
 0x112   :  { %v1812_v1 = vadd.f32 %v1811_v0, %v1810_v61  ;;  %v1881_v2 = vpop.f32.mrb[15].mxu1 }
 0x113   :  { %v2659_v3 = vadd.f32 %v1879_v62, %v1809_v59  ;;  %v1882_v4 = vadd.f32 %v1881_v2, %v1880_v63 }
 0x115   :  { %v2661_v5 = vadd.f32 %v1882_v4, %v1812_v1 }
 0x116   :  { %v1813_v6 = vpop.f32.mrb[16].mxu0 }
 0x117   :  { %v1883_v7 = vpop.f32.mrb[16].mxu1  ;;  %v1814_v8 = vpop.f32.mrb[17].mxu0 }
 0x118   :  { %v1815_v9 = vadd.f32 %v1814_v8, %v1813_v6  ;;  %v1884_v10 = vpop.f32.mrb[17].mxu1  ;;  %v1816_v11 = vpop.f32.mrb[18].mxu0 }
 0x119   :  { %v1885_v13 = vadd.f32 %v1884_v10, %v1883_v7  ;;  %v1886_v14 = vpop.f32.mrb[18].mxu1  ;;  %v1817_v15 = vpop.f32.mrb[19].mxu0 }
 0x11a   :  { %v1818_v16 = vadd.f32 %v1817_v15, %v1816_v11  ;;  %v1887_v17 = vpop.f32.mrb[19].mxu1 }
 0x11b   :  { %v2663_v18 = vadd.f32 %v1885_v13, %v1815_v9  ;;  %v1888_v19 = vadd.f32 %v1887_v17, %v1886_v14 }
 0x11d   :  { %v2665_v20 = vadd.f32 %v1888_v19, %v1818_v16 }
 0x11e   :  { %v1819_v21 = vpop.f32.mrb[20].mxu0 }
 0x11f   :  { %v1889_v22 = vpop.f32.mrb[20].mxu1  ;;  %v1820_v23 = vpop.f32.mrb[21].mxu0 }
 0x120   :  { %v1821_v25 = vadd.f32 %v1820_v23, %v1819_v21  ;;  %v1890_v27 = vpop.f32.mrb[21].mxu1  ;;  %v1822_v28 = vpop.f32.mrb[22].mxu0 }
 0x121   :  { %v1891_v29 = vadd.f32 %v1890_v27, %v1889_v22  ;;  %v1892_v30 = vpop.f32.mrb[22].mxu1  ;;  %v1823_v31 = vpop.f32.mrb[23].mxu0 }
 0x122   :  { %v1824_v32 = vadd.f32 %v1823_v31, %v1822_v28  ;;  %v1893_v33 = vpop.f32.mrb[23].mxu1 }
 0x123   :  { %v2667_v34 = vadd.f32 %v1891_v29, %v1821_v25  ;;  %v1894_v35 = vadd.f32 %v1893_v33, %v1892_v30 }
 0x125   :  { %v2669_v36 = vadd.f32 %v1894_v35, %v1824_v32 }
 0x126   :  { %v1825_v37 = vpop.f32.mrb[24].mxu0 }
 0x127   :  { %v1895_v39 = vpop.f32.mrb[24].mxu1  ;;  %v1826_v41 = vpop.f32.mrb[25].mxu0 }
 0x128   :  { %v1827_v42 = vadd.f32 %v1826_v41, %v1825_v37  ;;  %v1896_v43 = vpop.f32.mrb[25].mxu1  ;;  %v1828_v44 = vpop.f32.mrb[26].mxu0 }
 0x129   :  { %v1897_v45 = vadd.f32 %v1896_v43, %v1895_v39  ;;  %v1898_v46 = vpop.f32.mrb[26].mxu1  ;;  %v1829_v47 = vpop.f32.mrb[27].mxu0 }
 0x12a   :  { %v1830_v48 = vadd.f32 %v1829_v47, %v1828_v44  ;;  %v1899_v49 = vpop.f32.mrb[27].mxu1 }
 0x12b   :  { %v2671_v50 = vadd.f32 %v1897_v45, %v1827_v42  ;;  %v1900_v51 = vadd.f32 %v1899_v49, %v1898_v46 }
 0x12d   :  { %v2673_v52 = vadd.f32 %v1900_v51, %v1830_v48 }
 0x12e   :  { %v1831_v54 = vpop.f32.mrb[28].mxu0 }
 0x12f   :  { %v1901_v56 = vpop.f32.mrb[28].mxu1  ;;  %v1832_v57 = vpop.f32.mrb[29].mxu0 }
 0x130   :  { %v1833_v58 = vadd.f32 %v1832_v57, %v1831_v54  ;;  %v1902_v59 = vpop.f32.mrb[29].mxu1  ;;  %v1834_v60 = vpop.f32.mrb[30].mxu0 }
 0x131   :  { %v1903_v61 = vadd.f32 %v1902_v59, %v1901_v56  ;;  %v1904_v62 = vpop.f32.mrb[30].mxu1  ;;  %v1835_v63 = vpop.f32.mrb[31].mxu0 }
 0x132   :  { %v1836_v0 = vadd.f32 %v1835_v63, %v1834_v60  ;;  %v1905_v1 = vpop.f32.mrb[31].mxu1 }
 0x133   :  { %v2675_v2 = vadd.f32 %v1903_v61, %v1833_v58  ;;  %v1906_v4 = vadd.f32 %v1905_v1, %v1904_v62 }
 0x135   :  { %v2677_v6 = vadd.f32 %v1906_v4, %v1836_v0 }
 0x136   :  { %v1837_v7 = vpop.f32.mrb[32].mxu0 }
 0x137   :  { %v1907_v8 = vpop.f32.mrb[32].mxu1  ;;  %v1838_v9 = vpop.f32.mrb[33].mxu0 }
 0x138   :  { %v1839_v10 = vadd.f32 %v1838_v9, %v1837_v7  ;;  %v1908_v11 = vpop.f32.mrb[33].mxu1  ;;  %v1840_v13 = vpop.f32.mrb[34].mxu0 }
 0x139   :  { %v1909_v14 = vadd.f32 %v1908_v11, %v1907_v8  ;;  %v1910_v15 = vpop.f32.mrb[34].mxu1  ;;  %v1841_v16 = vpop.f32.mrb[35].mxu0 }
 0x13a   :  { %v1911_v17 = vpop.f32.mrb[35].mxu1 }
 0x13b   :  { %v2679_v19 = vadd.f32 %v1909_v14, %v1839_v10 }
 0x13e   :  { %v1929_v21 = vpop.f32.mrb[36].mxu0 }
 0x13f   :  { %v1999_v22 = vpop.f32.mrb[36].mxu1  ;;  %v1930_v23 = vpop.f32.mrb[37].mxu0 }
 0x140   :  { %v1931_v25 = vadd.f32 %v1930_v23, %v1929_v21  ;;  %v2000_v27 = vpop.f32.mrb[37].mxu1  ;;  %v1932_v28 = vpop.f32.mrb[38].mxu0 }
 0x141   :  { %v2001_v29 = vadd.f32 %v2000_v27, %v1999_v22  ;;  %v2002_v30 = vpop.f32.mrb[38].mxu1  ;;  %v1933_v31 = vpop.f32.mrb[39].mxu0 }
 0x142   :  { %v1184_v32 = vadd.f32 %v1931_v25, %v2647_v24  ;;  %v1934_v33 = vadd.f32 %v1933_v31, %v1932_v28  ;;  %v2003_v35 = vpop.f32.mrb[39].mxu1 }
 0x143   :  { %v2004_v37 = vadd.f32 %v2003_v35, %v2002_v30 }
 0x144   :  { %v1187_v39 = vadd.f32 %v1934_v33, %v2649_v26  ;;  %v1288_v41 = vadd.f32 %v2001_v29, %v1184_v32 }
 0x146   :  { %v1291_v42 = vadd.f32 %v2004_v37, %v1187_v39  ;;  %v1935_v43 = vpop.f32.mrb[40].mxu0  ;;  %v1456_v44 = vmul.f32 %v1288_v41, %v1288_v41 }
 0x147   :  { %v2005_v45 = vpop.f32.mrb[40].mxu1  ;;  %v1936_v46 = vpop.f32.mrb[41].mxu0 }
 0x148   :  { %v1937_v47 = vadd.f32 %v1936_v46, %v1935_v43  ;;  %v2006_v48 = vpop.f32.mrb[41].mxu1  ;;  %v1938_v49 = vpop.f32.mrb[42].mxu0  ;;  %v2106_v51 = vpack.c.bf16 %v1291_v42, %v1288_v41  ;;  %1472 = vadd.xlane.f32.xlu0 %v1456_v44  ;;  %v1457_v26 = vmul.f32 %v1291_v42, %v1291_v42 }
 0x149   :  { %v2007_v54 = vadd.f32 %v2006_v48, %v2005_v45  ;;  %v2008_v56 = vpop.f32.mrb[42].mxu1  ;;  %v1939_v57 = vpop.f32.mrb[43].mxu0 }
 0x14a   :  { %v1192_v24 = vadd.f32 %v1937_v47, %v2651_v38  ;;  %v1940_v58 = vadd.f32 %v1939_v57, %v1938_v49  ;;  %v2009_v59 = vpop.f32.mrb[43].mxu1  ;;  %2107 = vmatpush3.bf16.xpose.msra.mxu0 %v2106_v51 }
 0x14b   :  { %v2010_v60 = vadd.f32 %v2009_v59, %v2008_v56  ;;  %2108 = vmatprep.subr.bf16.mxu0 %v2231_v12 }
 0x14c   :  { %v1195_v61 = vadd.f32 %v1940_v58, %v2653_v40  ;;  %1474 = vadd.xlane.f32.xlu0 %v1457_v26  ;;  %v1296_v62 = vadd.f32 %v2007_v54, %v1192_v24 }
 0x14e   :  { %v1299_v63 = vadd.f32 %v2010_v60, %v1195_v61  ;;  %v1941_v0 = vpop.f32.mrb[44].mxu0  ;;  %v1458_v1 = vmul.f32 %v1296_v62, %v1296_v62 }
 0x14f   :  { %v1942_v4 = vpop.f32.mrb[45].mxu0  ;;  %v2011_v7 = vpop.f32.mrb[44].mxu1 }
 0x150   :  { %v1943_v8 = vadd.f32 %v1942_v4, %v1941_v0  ;;  %v1944_v9 = vpop.f32.mrb[46].mxu0  ;;  %v2012_v10 = vpop.f32.mrb[45].mxu1  ;;  %v2109_v38 = vpack.c.bf16 %v1299_v63, %v1296_v62  ;;  %1476 = vadd.xlane.f32.xlu1 %v1458_v1  ;;  %v1459_v40 = vmul.f32 %v1299_v63, %v1299_v63 }
 0x151   :  { %v2013_v11 = vadd.f32 %v2012_v10, %v2011_v7  ;;  %v1945_v13 = vpop.f32.mrb[47].mxu0  ;;  %v2014_v14 = vpop.f32.mrb[46].mxu1 }
 0x152   :  { %v1200_v15 = vadd.f32 %v1943_v8, %v2655_v53  ;;  %v1946_v16 = vadd.f32 %v1945_v13, %v1944_v9  ;;  %v2015_v17 = vpop.f32.mrb[47].mxu1  ;;  %2110 = vmatpush3.bf16.xpose.msra.mxu0 %v2109_v38 }
 0x153   :  { %v2016_v21 = vadd.f32 %v2015_v17, %v2014_v14  ;;  %2111 = vmatprep.subr.bf16.mxu0 %v2231_v12 }
 0x154   :  { %v1304_v22 = vadd.f32 %v2013_v11, %v1200_v15  ;;  %v1203_v23 = vadd.f32 %v1946_v16, %v2657_v55  ;;  %1478 = vadd.xlane.f32.xlu1 %v1459_v40 }
 0x156   :  { %v1307_v25 = vadd.f32 %v2016_v21, %v1203_v23  ;;  %v1947_v27 = vpop.f32.mrb[48].mxu0  ;;  %v1460_v28 = vmul.f32 %v1304_v22, %v1304_v22 }
 0x157   :  { %v1948_v29 = vpop.f32.mrb[49].mxu0  ;;  %v2017_v30 = vpop.f32.mrb[48].mxu1 }
 0x158   :  { %v2112_v31 = vpack.c.bf16 %v1307_v25, %v1304_v22  ;;  %v1949_v32 = vadd.f32 %v1948_v29, %v1947_v27  ;;  %v1950_v33 = vpop.f32.mrb[50].mxu0  ;;  %1480 = vadd.xlane.f32.xlu0 %v1460_v28  ;;  %v2018_v53 = vpop.f32.mrb[49].mxu1  ;;  %v1461_v35 = vmul.f32 %v1307_v25, %v1307_v25 }
 0x159   :  { %v1951_v37 = vpop.f32.mrb[51].mxu0  ;;  %v2019_v39 = vadd.f32 %v2018_v53, %v2017_v30  ;;  %v2020_v41 = vpop.f32.mrb[50].mxu1 }
 0x15a   :  { %v1208_v42 = vadd.f32 %v1949_v32, %v2659_v3  ;;  %v1952_v43 = vadd.f32 %v1951_v37, %v1950_v33  ;;  %1482 = vadd.xlane.f32.xlu1 %v1461_v35  ;;  %2113 = vmatpush3.bf16.xpose.msra.mxu0 %v2112_v31  ;;  %v2021_v55 = vpop.f32.mrb[51].mxu1 }
 0x15b   :  { %v2022_v44 = vadd.f32 %v2021_v55, %v2020_v41  ;;  %2114 = vmatprep.subr.bf16.mxu0 %v2231_v12 }
 0x15c   :  { %v1211_v45 = vadd.f32 %v1952_v43, %v2661_v5  ;;  %v1312_v46 = vadd.f32 %v2019_v39, %v1208_v42 }
 0x15e   :  { %v1315_v47 = vadd.f32 %v2022_v44, %v1211_v45  ;;  %v1953_v48 = vpop.f32.mrb[52].mxu0  ;;  %v1462_v49 = vmul.f32 %v1312_v46, %v1312_v46 }
 0x15f   :  { %v1954_v51 = vpop.f32.mrb[53].mxu0  ;;  %v2023_v54 = vpop.f32.mrb[52].mxu1 }
 0x160   :  { %v2115_v56 = vpack.c.bf16 %v1315_v47, %v1312_v46  ;;  %v1955_v57 = vadd.f32 %v1954_v51, %v1953_v48  ;;  %v1956_v24 = vpop.f32.mrb[54].mxu0  ;;  %1484 = vadd.xlane.f32.xlu0 %v1462_v49  ;;  %v2024_v3 = vpop.f32.mrb[53].mxu1  ;;  %v1463_v58 = vmul.f32 %v1315_v47, %v1315_v47 }
 0x161   :  { %v1957_v59 = vpop.f32.mrb[55].mxu0  ;;  %v2025_v26 = vadd.f32 %v2024_v3, %v2023_v54  ;;  %v2026_v60 = vpop.f32.mrb[54].mxu1 }
 0x162   :  { %v1216_v61 = vadd.f32 %v1955_v57, %v2663_v18  ;;  %v1958_v62 = vadd.f32 %v1957_v59, %v1956_v24  ;;  %1486 = vadd.xlane.f32.xlu1 %v1463_v58  ;;  %2116 = vmatpush3.bf16.xpose.msra.mxu0 %v2115_v56  ;;  %v2027_v5 = vpop.f32.mrb[55].mxu1 }
 0x163   :  { %v2028_v63 = vadd.f32 %v2027_v5, %v2026_v60  ;;  %2117 = vmatprep.subr.bf16.mxu0 %v2231_v12 }
 0x164   :  { %v1219_v0 = vadd.f32 %v1958_v62, %v2665_v20  ;;  %v1320_v1 = vadd.f32 %v2025_v26, %v1216_v61 }
 0x166   :  { %v1323_v4 = vadd.f32 %v2028_v63, %v1219_v0  ;;  %v1959_v7 = vpop.f32.mrb[56].mxu0  ;;  %v1464_v8 = vmul.f32 %v1320_v1, %v1320_v1 }
 0x167   :  { %v1960_v9 = vpop.f32.mrb[57].mxu0  ;;  %v2029_v10 = vpop.f32.mrb[56].mxu1 }
 0x168   :  { %v2118_v38 = vpack.c.bf16 %v1323_v4, %v1320_v1  ;;  %v1961_v11 = vadd.f32 %v1960_v9, %v1959_v7  ;;  %v1962_v13 = vpop.f32.mrb[58].mxu0  ;;  %1488 = vadd.xlane.f32.xlu0 %v1464_v8  ;;  %v2030_v18 = vpop.f32.mrb[57].mxu1  ;;  %v1465_v14 = vmul.f32 %v1323_v4, %v1323_v4 }
 0x169   :  { %v1963_v15 = vpop.f32.mrb[59].mxu0  ;;  %v2031_v16 = vadd.f32 %v2030_v18, %v2029_v10  ;;  %v2032_v17 = vpop.f32.mrb[58].mxu1 }
 0x16a   :  { %v1224_v40 = vadd.f32 %v1961_v11, %v2667_v34  ;;  %v1964_v21 = vadd.f32 %v1963_v15, %v1962_v13  ;;  %1490 = vadd.xlane.f32.xlu1 %v1465_v14  ;;  %2119 = vmatpush3.bf16.xpose.msra.mxu0 %v2118_v38  ;;  %v2033_v20 = vpop.f32.mrb[59].mxu1 }
 0x16b   :  { %v2034_v22 = vadd.f32 %v2033_v20, %v2032_v17  ;;  %2120 = vmatprep.subr.bf16.mxu0 %v2231_v12 }
 0x16c   :  { %v1227_v23 = vadd.f32 %v1964_v21, %v2669_v36  ;;  %v1328_v25 = vadd.f32 %v2031_v16, %v1224_v40 }
 0x16e   :  { %v1331_v27 = vadd.f32 %v2034_v22, %v1227_v23  ;;  %v1965_v28 = vpop.f32.mrb[60].mxu0  ;;  %v1466_v29 = vmul.f32 %v1328_v25, %v1328_v25 }
 0x16f   :  { %v1966_v30 = vpop.f32.mrb[61].mxu0  ;;  %v2035_v31 = vpop.f32.mrb[60].mxu1 }
 0x170   :  { %v2121_v32 = vpack.c.bf16 %v1331_v27, %v1328_v25  ;;  %v1967_v33 = vadd.f32 %v1966_v30, %v1965_v28  ;;  %v1968_v53 = vpop.f32.mrb[62].mxu0  ;;  %1492 = vadd.xlane.f32.xlu0 %v1466_v29  ;;  %v2036_v34 = vpop.f32.mrb[61].mxu1  ;;  %v1467_v35 = vmul.f32 %v1331_v27, %v1331_v27 }
 0x171   :  { %v1969_v37 = vpop.f32.mrb[63].mxu0  ;;  %v2037_v39 = vadd.f32 %v2036_v34, %v2035_v31  ;;  %v2038_v41 = vpop.f32.mrb[62].mxu1 }
 0x172   :  { %v1232_v42 = vadd.f32 %v1967_v33, %v2671_v50  ;;  %v1970_v43 = vadd.f32 %v1969_v37, %v1968_v53  ;;  %1494 = vadd.xlane.f32.xlu1 %v1467_v35  ;;  %2122 = vmatpush3.bf16.xpose.msra.mxu0 %v2121_v32  ;;  %v2039_v36 = vpop.f32.mrb[63].mxu1  ;;  %v1606_v53 = vlaneseq }
 0x173   :  { %v2040_v55 = vadd.f32 %v2039_v36, %v2038_v41  ;;  %2123 = vmatprep.subr.bf16.mxu0 %v2231_v12 }
 0x174   :  { %v1235_v44 = vadd.f32 %v1970_v43, %v2673_v52  ;;  %v1336_v45 = vadd.f32 %v2037_v39, %v1232_v42  ;;  %v1607_v34 = vshrl.u32 %v1606_v53, 7 }
 0x176   :  { %v1339_v46 = vadd.f32 %v2040_v55, %v1235_v44  ;;  %v1971_v47 = vpop.f32.mrb[64].mxu0  ;;  %v1468_v48 = vmul.f32 %v1336_v45, %v1336_v45  ;;  %v1608_v35 = vsub.s32 0, %v1607_v34 }
 0x177   :  { %v1972_v49 = vpop.f32.mrb[65].mxu0  ;;  %v2041_v51 = vpop.f32.mrb[64].mxu1 }
 0x178   :  { %v2124_v54 = vpack.c.bf16 %v1339_v46, %v1336_v45  ;;  %v1973_v56 = vadd.f32 %v1972_v49, %v1971_v47  ;;  %v1974_v57 = vpop.f32.mrb[66].mxu0  ;;  %1496 = vadd.xlane.f32.xlu0 %v1468_v48  ;;  %v2042_v50 = vpop.f32.mrb[65].mxu1  ;;  %v1469_v24 = vmul.f32 %v1339_v46, %v1339_v46 }
 0x179   :  { %v1975_v3 = vpop.f32.mrb[67].mxu0  ;;  %v2043_v58 = vadd.f32 %v2042_v50, %v2041_v51  ;;  %v2044_v59 = vpop.f32.mrb[66].mxu1 }
 0x17a   :  { %v1240_v26 = vadd.f32 %v1973_v56, %v2675_v2  ;;  %v1976_v60 = vadd.f32 %v1975_v3, %v1974_v57  ;;  %1498 = vadd.xlane.f32.xlu1 %v1469_v24  ;;  %2125 = vmatpush3.bf16.xpose.msra.mxu0 %v2124_v54  ;;  %v2045_v52 = vpop.f32.mrb[67].mxu1 }
 0x17b   :  { %v2046_v61 = vadd.f32 %v2045_v52, %v2044_v59  ;;  %2126 = vmatprep.subr.bf16.mxu0 %v2231_v12 }
 0x17c   :  { %v1243_v62 = vadd.f32 %v1976_v60, %v2677_v6  ;;  %v1344_v5 = vadd.f32 %v2043_v58, %v1240_v26 }
 0x17e   :  { %v1347_v63 = vadd.f32 %v2046_v61, %v1243_v62  ;;  %v1977_v0 = vpop.f32.mrb[68].mxu0  ;;  %v1470_v1 = vmul.f32 %v1344_v5, %v1344_v5 }
 0x17f   :  { %v1978_v4 = vpop.f32.mrb[69].mxu0  ;;  %v2047_v7 = vpop.f32.mrb[68].mxu1 }
 0x180   :  { %v2127_v8 = vpack.c.bf16 %v1347_v63, %v1344_v5  ;;  %v1979_v9 = vadd.f32 %v1978_v4, %v1977_v0  ;;  %1500 = vadd.xlane.f32.xlu0 %v1470_v1  ;;  %v2048_v10 = vpop.f32.mrb[69].mxu1  ;;  %v1471_v2 = vmul.f32 %v1347_v63, %v1347_v63  ;;  %v1980_v38 = vpop.f32.mrb[70].mxu0 }
 0x181   :  { %v2049_v11 = vadd.f32 %v2048_v10, %v2047_v7  ;;  %v1981_v13 = vpop.f32.mrb[71].mxu0  ;;  %v2050_v18 = vpop.f32.mrb[70].mxu1 }
 0x182   :  { %v1248_v14 = vadd.f32 %v1979_v9, %v2679_v19  ;;  %1502 = vadd.xlane.f32.xlu1 %v1471_v2  ;;  %2128 = vmatpush3.bf16.xpose.msra.mxu0 %v2127_v8  ;;  %v2051_v12 = vpop.f32.mrb[71].mxu1 }
 0x184   :  { %v1352_v6 = vadd.f32 %v2049_v11, %v1248_v14 }
 0x186   :  { %v1453_v15 = vmul.f32 %v1352_v6, %v1352_v6 }
 0x188   :  { %1454 = vadd.xlane.f32.xlu0 %v1453_v15 }
 0x189   :  { %2103 = vmatmul.mubr.f32.vlgmr.msra.gmra.mrb[72].mxu0 %v1352_v6 }
 0x1d5   :  { %v1473_v16 = vpop.xlane.xlu0 %1472 }
 0x1d6   :  { %1574 = vxpose.xlu1.b32.start [1/16] (narrow) %v1473_v16, 8 }
 0x1d9   :  { %v1475_v17 = vpop.xlane.xlu0 %1474 }
 0x1da   :  { %1575 = vxpose.xlu1.b32.cont [2/16] (narrow) %v1475_v17, 8 }
 0x1dd   :  { %v1477_v40 = vpop.xlane.xlu1 %1476 }
 0x1de   :  { %1576 = vxpose.xlu1.b32.cont [3/16] (narrow) %v1477_v40, 8 }
 0x1e1   :  { %v1479_v21 = vpop.xlane.xlu1 %1478 }
 0x1e2   :  { %1577 = vxpose.xlu1.b32.cont [4/16] (narrow) %v1479_v21, 8 }
 0x1e5   :  { %v1481_v20 = vpop.xlane.xlu0 %1480 }
 0x1e6   :  { %1578 = vxpose.xlu1.b32.cont [5/16] (narrow) %v1481_v20, 8 }
 0x1e7   :  { %v1483_v22 = vpop.xlane.xlu1 %1482 }
 0x1ea   :  { %1579 = vxpose.xlu1.b32.cont [6/16] (narrow) %v1483_v22, 8 }
 0x1ed   :  { %v1485_v19 = vpop.xlane.xlu0 %1484 }
 0x1ee   :  { %1580 = vxpose.xlu1.b32.cont [7/16] (narrow) %v1485_v19, 8 }
 0x1ef   :  { %v1487_v23 = vpop.xlane.xlu1 %1486 }
 0x1f2   :  { %1581 = vxpose.xlu1.b32.cont [8/16] (narrow) %v1487_v23, 8 }
 0x1f5   :  { %v1489_v25 = vpop.xlane.xlu0 %1488 }
 0x1f6   :  { %1582 = vxpose.xlu1.b32.cont [9/16] (narrow) %v1489_v25, 8 }
 0x1f7   :  { %v1491_v27 = vpop.xlane.xlu1 %1490 }
 0x1fa   :  { %1583 = vxpose.xlu1.b32.cont [10/16] (narrow) %v1491_v27, 8 }
 0x1fd   :  { %v1493_v28 = vpop.xlane.xlu0 %1492 }
 0x1fe   :  { %1584 = vxpose.xlu1.b32.cont [11/16] (narrow) %v1493_v28, 8 }
 0x1ff   :  { %v1495_v29 = vpop.xlane.xlu1 %1494 }
 0x202   :  { %1585 = vxpose.xlu1.b32.cont [12/16] (narrow) %v1495_v29, 8 }
 0x205   :  { %v1497_v30 = vpop.xlane.xlu0 %1496 }
 0x206   :  { %1586 = vxpose.xlu1.b32.cont [13/16] (narrow) %v1497_v30, 8 }
 0x207   :  { %v1499_v31 = vpop.xlane.xlu1 %1498 }
 0x20a   :  { %1587 = vxpose.xlu1.b32.cont [14/16] (narrow) %v1499_v31, 8 }
 0x20d   :  { %v1501_v32 = vpop.xlane.xlu0 %1500 }
 0x20e   :  { %1588 = vxpose.xlu1.b32.cont [15/16] (narrow) %v1501_v32, 8 }
 0x20f   :  { %v1503_v33 = vpop.xlane.xlu1 %1502 }
 0x212   :  { %1589 = vxpose.xlu1.b32.end [16/16] (narrow) %v1503_v33, 8 }
 0x215   :  { %v1455_v41 = vpop.xlane.xlu0 %1454 }
 0x256   :  { %v1590_v37 = vpop.trf.xlu1 }
 0x257   :  { %v1609_v39 = vrot.slane %v1590_v37, %v1608_v35 }
 0x259   :  { %v1610_v43 = vadd.f32 %v1609_v39, %v1455_v41 }
 0x25c   :  { %v1570_v42 = vpop.f32.mrb[72].mxu0 }
 0x25d   :  { %v1611_v36 = vmul.f32 2.0, %v1570_v42  ;;  %v2104_v55 = vpop.f32.mrb[73].mxu0 }
 0x25f   :  { %v1612_v44 = vsub.f32 %v1610_v43, %v1611_v36 }
 0x261   :  { %v1613_v45 = vmax.f32 %v1612_v44, 0.0 }
 0x263   :  { %2205 = vrsqrt.f32 %v1613_v45  ;;  %vm1616_vm1 = vcmp.eq.f32.partialorder %v1613_v45, inf  ;;  %v1619_v48 = vand.u32 2147483648, %v1613_v45  ;;  %vm1618_vm2 = vcmp.eq.f32.partialorder %v1613_v45, 0.0 }
 0x26d   :  { %v2206_v46 = vpop.eup %2205 }
 0x26e   :  { %v1615_v47 = vmul.f32 %v2206_v46, %v1613_v45 }
 0x270   :  { %v1617_v49 = vsel %vm1616_vm1, %v1613_v45, %v1615_v47 }
 0x271   :  { %v1620_v51 = vsel %vm1618_vm2, %v1619_v48, %v1617_v49 }
 0x272   :  { %v1621_v54 = vsub.f32 0.0, %v1620_v51 }
 0x274   :  { %1622 = vst [vmem:[#allocation3] sm:$0xff] %v1621_v54 }
 0x275   :  { %2218 = shalt.err (!%p2215_p4)
}
 0x276   :  { %s2219_s22 = scalar_lea.hbm %s2719_s2, 128 }
 0x277   :  { %p2220_p5 = scmp.ne.s32.totalorder %s2719_s2, %s2219_s22  ;;  %p2223_p6 = scmp.lt.u32.totalorder %s2219_s22, %s2719_s2 }
 0x279   :  { %p2225_p7 = pnand %p2223_p6, %p2220_p5 }
 0x27b   :  { %2228 = shalt.err (!%p2225_p7)
}
 0x27c   :  { %1632 = dma.vmem_to_hbm [thread:$0]  %s1630_s18, 128, %s2719_s2, [#allocation4]  }
 0x27d   :  { %2229 = dma.done.wait [#allocation4], 128  }
 0x27e   :  { %2230 = vsyncadd [#allocation4], 4294967168 }
 0x27f   :  { %1636 = vsyncpa [#allocation4], 1 }

</bundles_post_ra>
